<compile_context>
chip_gen: v7x
topology: tpu7x:2x2x1
jax: 0.10.0
libtpu: 0.0.40
codegen_flags: <defaults>
</compile_context>

<pallas_src>
from collections import OrderedDict

import numpy as np
import jax
import jax.numpy as jnp
from jax.experimental import pallas as pl
from jax.experimental.pallas import tpu as pltpu


# ----------------------------- Pallas kernels ------------------------------------

def _make_iou_cdelta_kernel(W, H, nobj_scale, iou_thresh):
    inv_W, inv_H = 1.0 / float(W), 1.0 / float(H)

    def kernel(out_ref, bias_ref, tbox_ref, postp_ref, cdelta_ref):
        out = out_ref[0]          # (K, M)   channel-major, M = H*W*N on lanes
        bias = bias_ref[...]      # (4, M)   shared across batch
        tb = tbox_ref[0]          # (T, 4)   truth boxes of this image

        # post-processed boxes (x, y, w, h) in normalized image coords, each (1, M)
        px = (bias[0:1, :] + out[0:1, :]) * inv_W
        py = (bias[1:2, :] + out[1:2, :]) * inv_H
        pw = bias[2:3, :] * jnp.exp(out[2:3, :]) * inv_W
        ph = bias[3:4, :] * jnp.exp(out[3:4, :]) * inv_H
        postp_ref[0] = jnp.concatenate([px, py, pw, ph], axis=0)   # (4, M)

        # IoU of every predicted box vs every truth box of this image -> (T, M)
        tx = tb[:, 0:1]   # (T, 1)
        ty = tb[:, 1:2]
        tw = tb[:, 2:3]
        th = tb[:, 3:4]
        iw = jnp.maximum(jnp.minimum(px + pw * 0.5, tx + tw * 0.5) -
                         jnp.maximum(px - pw * 0.5, tx - tw * 0.5), 0.0)
        ih = jnp.maximum(jnp.minimum(py + ph * 0.5, ty + th * 0.5) -
                         jnp.maximum(py - ph * 0.5, ty - th * 0.5), 0.0)
        inter = iw * ih
        union = pw * ph + tw * th - inter
        ious = jnp.where(union > 0.0, inter / jnp.where(union > 0.0, union, 1.0), 0.0)
        max_iou = jnp.max(ious, axis=0, keepdims=True)             # (1, M)

        # initial no-object confidence delta (only non-zero channel of the initial deltas);
        # zeroed where some truth box overlaps the prediction with IoU > 0.6
        conf = out[4:5, :]                                         # (1, M)
        cdelta_ref[0] = jnp.where(max_iou > iou_thresh, 0.0, nobj_scale * (0.0 - conf))

    return kernel


def iou_cdelta_pallas(out_bkm, bias_km, tbox_bt4, W, H, nobj_scale, iou_thresh):
    B, K, M = out_bkm.shape
    T = tbox_bt4.shape[1]
    kernel = _make_iou_cdelta_kernel(W, H, nobj_scale, iou_thresh)
    postp, cdelta = pl.pallas_call(
        kernel,
        out_shape=(jax.ShapeDtypeStruct((B, 4, M), jnp.float32),
                   jax.ShapeDtypeStruct((B, 1, M), jnp.float32)),
        grid=(B,),
        in_specs=[pl.BlockSpec((1, K, M), lambda b: (b, 0, 0)),
                  pl.BlockSpec((4, M), lambda b: (0, 0)),          # shared, resident
                  pl.BlockSpec((1, T, 4), lambda b: (b, 0, 0))],
        out_specs=(pl.BlockSpec((1, 4, M), lambda b: (b, 0, 0)),
                   pl.BlockSpec((1, 1, M), lambda b: (b, 0, 0))),
        compiler_params=pltpu.CompilerParams(
            dimension_semantics=("parallel",),
            vmem_limit_bytes=32 * 1024 * 1024),
    )(out_bkm, bias_km, tbox_bt4)
    return postp, cdelta


def _ssq_kernel(x_ref, o_ref):
    @pl.when(pl.program_id(0) == 0)
    def _():
        o_ref[0, 0] = 0.0
    x = x_ref[...]
    o_ref[0, 0] += jnp.sum(x * x)


def sum_of_squares_pallas(x_flat):
    """Lane-dense, tiled sum-of-squares of a flat f32 vector."""
    LANES = 512
    ROWS = 128
    tile = LANES * ROWS
    n = x_flat.shape[0]
    n_pad = pl.cdiv(n, tile) * tile
    x_pad = jnp.pad(x_flat.astype(jnp.float32), (0, n_pad - n))
    x2d = x_pad.reshape(-1, LANES)
    n_blocks = x2d.shape[0] // ROWS
    out = pl.pallas_call(
        _ssq_kernel,
        out_shape=jax.ShapeDtypeStruct((1, 1), jnp.float32),
        grid=(n_blocks,),
        in_specs=[pl.BlockSpec((ROWS, LANES), lambda i: (i, 0))],
        out_specs=pl.BlockSpec((1, 1), lambda i: (0, 0),
                               memory_space=pltpu.MemorySpace.SMEM),
        compiler_params=pltpu.CompilerParams(
            dimension_semantics=("arbitrary",),
            vmem_limit_bytes=32 * 1024 * 1024),
    )(x2d)
    return out[0, 0]


# ----------------------------- host-side helpers ---------------------------------

def calc_iou_np(a, b):
    """Center-format (x, y, w, h) IoU, 0 when union <= 0."""
    iw = np.maximum(np.minimum(a[..., 0] + a[..., 2] * 0.5, b[..., 0] + b[..., 2] * 0.5) -
                    np.maximum(a[..., 0] - a[..., 2] * 0.5, b[..., 0] - b[..., 2] * 0.5), 0.0)
    ih = np.maximum(np.minimum(a[..., 1] + a[..., 3] * 0.5, b[..., 1] + b[..., 3] * 0.5) -
                    np.maximum(a[..., 1] - a[..., 3] * 0.5, b[..., 1] - b[..., 3] * 0.5), 0.0)
    inter = iw * ih
    union = a[..., 2] * a[..., 3] + b[..., 2] * b[..., 3] - inter
    return np.where(union > 0.0, inter / np.where(union > 0.0, union, 1.0), 0.0)


def one_hot_encode(cat, n_classes):
    v = np.zeros((n_classes,), dtype=np.float32)
    v[int(cat)] = 1.0
    return v


def apply_sort_args(x, args, length):
    x2 = np.zeros_like(x)
    for index, arg in enumerate(args):
        x2[length * index: length * index + length] = x[arg * length: length * arg + length]
    return x2


def calculate_biases_km(H, W, priors_arr):
    """Shared bias tensor, channel-major (4, M) with M = (h*W + w)*N + n."""
    N = priors_arr.shape[0]
    biases = np.zeros((H, W, N, 4), dtype=np.float32)
    biases[..., 0] = np.arange(W, dtype=np.float32)[None, :, None]
    biases[..., 1] = np.arange(H, dtype=np.float32)[:, None, None]
    biases[..., 2] = priors_arr[:, 0][None, None, :]
    biases[..., 3] = priors_arr[:, 1][None, None, :]
    return np.ascontiguousarray(biases.reshape(H * W * N, 4).T)   # (4, M)


# ----------------------------- RegionLossV2 --------------------------------------

class RegionLossV2:
    def __init__(self, priors, threshold=0.5, n_classes=20):
        self.priors = priors
        self.threshold = threshold
        self.n_classes = n_classes
        self.obj_scale = 5
        self.nobj_scale = 1
        self.seen = 0

    def forward(self, output_nchw, target):
        K = 5 + self.n_classes
        B, Z, H, W = output_nchw.shape
        N = Z // K
        T = target.shape[1]
        M = H * W * N
        priors_arr = np.asarray(self.priors, dtype=np.float32).reshape(N, 2)

        # ---- device (Pallas) hot path: channel-major (K on sublanes, M on lanes) ----
        # out_bkm[b, k, (h*W+w)*N + n] == output_nchw[b, n*K + k, h, w]
        out_bkm = jnp.transpose(output_nchw.reshape(B, N, K, H * W),
                                (0, 2, 3, 1)).reshape(B, K, M).astype(jnp.float32)
        bias_km = jnp.asarray(calculate_biases_km(H, W, priors_arr))          # (4, M) shared
        tbox_bt4 = jnp.asarray(target[:, :, 1:], dtype=jnp.float32)           # (B, T, 4)

        postp_b4m, cdelta_b1m = iou_cdelta_pallas(
            out_bkm, bias_km, tbox_bt4, W, H, float(self.nobj_scale), 0.6)

        # ---- host-side target assignment (mirrors the PyTorch reference) ----
        output_np = np.transpose(np.asarray(output_nchw, dtype=np.float32),
                                 (0, 2, 3, 1)).reshape(B, H, W, N, K)          # (B,H,W,N,K)
        deltas_np = np.zeros((B, H, W, N, K), dtype=np.float32)
        deltas_np[..., 4] = np.asarray(cdelta_b1m).reshape(B, H, W, N)         # conf channel
        postp_np = np.transpose(np.asarray(postp_b4m), (0, 2, 1)).reshape(B, H, W, N, 4)
        target_np = np.asarray(target, dtype=np.float32).copy()

        truth_boxes = target_np[:, :, 1:].copy()
        truth_classes = target_np[:, :, 0].copy()
        i_idx = (truth_boxes[:, :, 0] * W).astype(np.int64)
        j_idx = (truth_boxes[:, :, 1] * H).astype(np.int64)

        tbs_shifted = truth_boxes.copy()
        tbs_shifted[:, :, 0] = 0
        tbs_shifted[:, :, 1] = 0

        output_shifted = np.zeros((B, T, N, 4), dtype=np.float32)
        for b in range(B):
            for t in range(T):
                output_shifted[b, t] = postp_np[b, j_idx[b, t], i_idx[b, t]]
        output_shifted[:, :, :, :2] = 0

        ious2 = calc_iou_np(np.broadcast_to(tbs_shifted[:, :, None, :], (B, T, N, 4)),
                            output_shifted)                                    # (B,T,N)
        max_ious = ious2.max(axis=2)
        max_indices = ious2.argmax(axis=2)

        priors_volume = np.zeros((B, T, 2), dtype=np.float32)
        for b in range(B):
            for t in range(T):
                if max_ious[b, t] != 0.0:
                    priors_volume[b, t] = priors_arr[max_indices[b, t]]

        tx = truth_boxes[:, :, 0] * W - i_idx.astype(np.float32)
        ty = truth_boxes[:, :, 1] * H - j_idx.astype(np.float32)
        with np.errstate(divide="ignore", invalid="ignore"):
            tw = np.log(truth_boxes[:, :, 2] * W / priors_volume[:, :, 0])
            th = np.log(truth_boxes[:, :, 3] * H / priors_volume[:, :, 1])
        tw[np.isnan(tw)] = 0.0
        th[np.isnan(th)] = 0.0

        scales = np.broadcast_to(
            (1.0 * (2.0 - truth_boxes[:, :, 2] * truth_boxes[:, :, 3]))[:, :, None],
            (B, T, 4)).astype(np.float32).copy()
        t_mask = scales != 1.0

        p_mask = np.zeros(deltas_np.shape, dtype=bool)
        o_mask = np.zeros(deltas_np.shape, dtype=bool)
        c_mask = np.zeros(deltas_np.shape, dtype=bool)
        for b in range(B):
            duplicate_dict = {}
            for t in range(T):
                if tx[b, t] == 0.0 and ty[b, t] == 0.0 and tw[b, t] == 0.0 and th[b, t] == 0.0:
                    break
                cur_j = int(j_idx[b, t]); cur_i = int(i_idx[b, t]); max_n = int(max_indices[b, t])
                p_mask[b, cur_j, cur_i, max_n, :4] = True
                o_mask[b, cur_j, cur_i, max_n, 4] = True
                c_mask[b, cur_j, cur_i, max_n, 5:] = True
                key = (cur_i, cur_j, max_n)
                duplicate_dict.setdefault(key, []).append((b, t))
            for key in duplicate_dict.keys():
                items = duplicate_dict[key]
                if len(items) > 1:
                    for item in items[:-1]:
                        truth_boxes[item[0]][item[1]] = -1
                        target_np[item[0], item[1]] = -1
                        truth_classes[item[0]][item[1]] = -1
                        t_mask[item[0]][item[1]] = 0

        t_volume = np.stack([tx, ty, tw, th], axis=2)
        t_volume = t_volume[t_mask].astype(np.float32)
        scales_sel = scales[t_mask].astype(np.float32)

        sorted_t_volume = np.zeros(t_volume.shape, dtype=np.float32)
        sorted_scales = np.zeros(scales_sel.shape, dtype=np.float32)
        sorted_truth_classes = np.zeros(truth_classes[truth_classes > -1].shape, dtype=np.float32)
        sorted_t_i = 0
        for b in range(B):
            max_indices_batch = max_indices[b][target_np[b, :, 1] > -1]
            ts = truth_boxes[b][truth_boxes[b] > -1].reshape(-1, 4)
            i_s = (ts[:, 0] * W).astype(np.int64)
            j_s = (ts[:, 1] * H).astype(np.int64)
            ps = list(zip([int(v) for v in j_s], [int(v) for v in i_s],
                          [int(v) for v in max_indices_batch]))
            sort_args = list(OrderedDict(sorted(enumerate(ps), key=lambda x: x[1])).keys())
            lo, hi = sorted_t_i * 4, 4 * (sorted_t_i + len(sort_args))
            sub_sorted_t = apply_sort_args(t_volume[lo:hi], sort_args, 4)
            sub_sorted_s = apply_sort_args(scales_sel[lo:hi], sort_args, 4)
            sub_sorted_c = apply_sort_args(truth_classes[b][truth_classes[b] > -1], sort_args, 1)
            sorted_t_volume[lo:hi] = sub_sorted_t
            sorted_scales[lo:hi] = sub_sorted_s
            sorted_truth_classes[sorted_t_i: sorted_t_i + len(sort_args)] = sub_sorted_c
            sorted_t_i += len(sort_args)

        deltas_np[p_mask] = sorted_scales * (sorted_t_volume - output_np[p_mask])
        deltas_np[o_mask] = 5.0 * (1.0 - output_np[o_mask])
        # rescore / background branches are False in the reference; skipped.

        class_target = np.zeros(output_np[c_mask].shape, dtype=np.float32)
        class_scale = 1.0
        ci = 0
        for cat in sorted_truth_classes:
            class_target[ci: ci + self.n_classes] = one_hot_encode(cat, self.n_classes)
            ci += self.n_classes
        deltas_np[c_mask] = class_scale * (class_target - output_np[c_mask])

        # ---- device (Pallas) lane-dense tiled reduction for the final cost ----
        deltas_dev = jnp.asarray(deltas_np.reshape(-1), dtype=jnp.float32)
        ssq = sum_of_squares_pallas(deltas_dev)
        cost = jnp.sqrt(ssq) ** 2    # matches the reference formulation exactly
        return cost


# ----------------------------- demo ----------------------------------------------

if __name__ == "__main__":
    key = jax.random.PRNGKey(0)
    B, n_classes, N, H, W, T = 2, 20, 5, 8, 8, 3
    K = 5 + n_classes
    priors = [1.08, 1.19, 3.42, 4.41, 6.63, 11.38, 9.42, 5.11, 16.62, 10.52]  # N = 5 anchors

    k1, k2, k3, k4 = jax.random.split(key, 4)
    output = 0.5 * jax.random.normal(k1, (B, N * K, H, W), dtype=jnp.float32)   # NCHW like PyTorch
    cls = jax.random.randint(k2, (B, T, 1), 0, n_classes).astype(jnp.float32)
    xy = jax.random.uniform(k3, (B, T, 2), minval=0.1, maxval=0.9, dtype=jnp.float32)
    wh = jax.random.uniform(k4, (B, T, 2), minval=0.05, maxval=0.3, dtype=jnp.float32)
    target = jnp.concatenate([cls, xy, wh], axis=2)                              # (B, T, 5)

    loss = RegionLossV2(priors, n_classes=n_classes)
    cost = loss.forward(output, target)
    cost = jax.block_until_ready(cost)
    assert np.isfinite(float(cost))
    print("KERNEL_OK")
</pallas_src>

<mosaic_0001>
module attributes {stable_mosaic.version = 11 : i64} {
  func.func @kernel(%arg0: i32, %arg1: memref<1x25x320xf32, #tpu.memory_space<vmem>>, %arg2: memref<4x320xf32, #tpu.memory_space<vmem>>, %arg3: memref<1x3x4xf32, #tpu.memory_space<vmem>>, %arg4: memref<1x4x320xf32, #tpu.memory_space<vmem>>, %arg5: memref<1x1x320xf32, #tpu.memory_space<vmem>>) attributes {dimension_semantics = [#tpu.dimension_semantics<parallel>], iteration_bounds = array<i64: 2>, scalar_prefetch = 0 : i64, scratch_operands = 0 : i64, tpu.core_type = #tpu.core_type<tc>, window_params = [{transform_indices = @transform_0, window_bounds = array<i64: 1, 25, 320>}, {pipeline_mode = #tpu.pipeline_mode<synchronous>, transform_indices = @transform_1, window_bounds = array<i64: 4, 320>}, {transform_indices = @transform_2, window_bounds = array<i64: 1, 3, 4>}, {transform_indices = @transform_3, window_bounds = array<i64: 1, 4, 320>}, {transform_indices = @transform_4, window_bounds = array<i64: 1, 1, 320>}]} {
    %c0 = arith.constant 0 : index
    %c0_0 = arith.constant 0 : index
    %c0_1 = arith.constant 0 : index
    %0 = vector.load %arg1[%c0, %c0_0, %c0_1] : memref<1x25x320xf32, #tpu.memory_space<vmem>>, vector<1x25x320xf32>
    %1 = vector.shape_cast %0 : vector<1x25x320xf32> to vector<25x320xf32>
    %c0_2 = arith.constant 0 : index
    %c0_3 = arith.constant 0 : index
    %2 = vector.load %arg2[%c0_2, %c0_3] : memref<4x320xf32, #tpu.memory_space<vmem>>, vector<4x320xf32>
    %c0_4 = arith.constant 0 : index
    %c0_5 = arith.constant 0 : index
    %c0_6 = arith.constant 0 : index
    %3 = vector.load %arg3[%c0_4, %c0_5, %c0_6] : memref<1x3x4xf32, #tpu.memory_space<vmem>>, vector<1x3x4xf32>
    %4 = vector.shape_cast %3 : vector<1x3x4xf32> to vector<3x4xf32>
    %5 = vector.extract_strided_slice %2 {offsets = [0, 0], sizes = [1, 320], strides = [1, 1]} : vector<4x320xf32> to vector<1x320xf32>
    %6 = vector.extract_strided_slice %1 {offsets = [0, 0], sizes = [1, 320], strides = [1, 1]} : vector<25x320xf32> to vector<1x320xf32>
    %7 = arith.addf %5, %6 : vector<1x320xf32>
    %cst = arith.constant 1.250000e-01 : f32
    %8 = vector.broadcast %cst : f32 to vector<1x320xf32>
    %9 = arith.mulf %7, %8 : vector<1x320xf32>
    %10 = vector.extract_strided_slice %2 {offsets = [1, 0], sizes = [1, 320], strides = [1, 1]} : vector<4x320xf32> to vector<1x320xf32>
    %11 = vector.extract_strided_slice %1 {offsets = [1, 0], sizes = [1, 320], strides = [1, 1]} : vector<25x320xf32> to vector<1x320xf32>
    %12 = arith.addf %10, %11 : vector<1x320xf32>
    %cst_7 = arith.constant 1.250000e-01 : f32
    %13 = vector.broadcast %cst_7 : f32 to vector<1x320xf32>
    %14 = arith.mulf %12, %13 : vector<1x320xf32>
    %15 = vector.extract_strided_slice %2 {offsets = [2, 0], sizes = [1, 320], strides = [1, 1]} : vector<4x320xf32> to vector<1x320xf32>
    %16 = vector.extract_strided_slice %1 {offsets = [2, 0], sizes = [1, 320], strides = [1, 1]} : vector<25x320xf32> to vector<1x320xf32>
    %17 = math.exp %16 : vector<1x320xf32>
    %18 = arith.mulf %15, %17 : vector<1x320xf32>
    %cst_8 = arith.constant 1.250000e-01 : f32
    %19 = vector.broadcast %cst_8 : f32 to vector<1x320xf32>
    %20 = arith.mulf %18, %19 : vector<1x320xf32>
    %21 = vector.extract_strided_slice %2 {offsets = [3, 0], sizes = [1, 320], strides = [1, 1]} : vector<4x320xf32> to vector<1x320xf32>
    %22 = vector.extract_strided_slice %1 {offsets = [3, 0], sizes = [1, 320], strides = [1, 1]} : vector<25x320xf32> to vector<1x320xf32>
    %23 = math.exp %22 : vector<1x320xf32>
    %24 = arith.mulf %21, %23 : vector<1x320xf32>
    %cst_9 = arith.constant 1.250000e-01 : f32
    %25 = vector.broadcast %cst_9 : f32 to vector<1x320xf32>
    %26 = arith.mulf %24, %25 : vector<1x320xf32>
    %27 = tpu.concatenate %9, %14, %20, %26 in 0 : vector<1x320xf32>, vector<1x320xf32>, vector<1x320xf32>, vector<1x320xf32> -> vector<4x320xf32>
    %c0_10 = arith.constant 0 : index
    %c0_11 = arith.constant 0 : index
    %c0_12 = arith.constant 0 : index
    %28 = vector.load %arg4[%c0_10, %c0_11, %c0_12] : memref<1x4x320xf32, #tpu.memory_space<vmem>>, vector<1x4x320xf32>
    %29 = vector.shape_cast %28 : vector<1x4x320xf32> to vector<4x320xf32>
    %30 = vector.shape_cast %27 : vector<4x320xf32> to vector<1x4x320xf32>
    tpu.vector_store %arg4[%c0_10, %c0_11, %c0_12], %30 {strides = array<i32>} : memref<1x4x320xf32, #tpu.memory_space<vmem>>, vector<1x4x320xf32>,
    %31 = vector.extract_strided_slice %4 {offsets = [0, 0], sizes = [3, 1], strides = [1, 1]} : vector<3x4xf32> to vector<3x1xf32>
    %32 = vector.extract_strided_slice %4 {offsets = [0, 1], sizes = [3, 1], strides = [1, 1]} : vector<3x4xf32> to vector<3x1xf32>
    %33 = vector.extract_strided_slice %4 {offsets = [0, 2], sizes = [3, 1], strides = [1, 1]} : vector<3x4xf32> to vector<3x1xf32>
    %34 = vector.extract_strided_slice %4 {offsets = [0, 3], sizes = [3, 1], strides = [1, 1]} : vector<3x4xf32> to vector<3x1xf32>
    %cst_13 = arith.constant 5.000000e-01 : f32
    %35 = vector.broadcast %cst_13 : f32 to vector<1x320xf32>
    %36 = arith.mulf %20, %35 : vector<1x320xf32>
    %37 = arith.addf %9, %36 : vector<1x320xf32>
    %cst_14 = arith.constant 5.000000e-01 : f32
    %38 = vector.broadcast %cst_14 : f32 to vector<3x1xf32>
    %39 = arith.mulf %33, %38 : vector<3x1xf32>
    %40 = arith.addf %31, %39 : vector<3x1xf32>
    %41 = vector.broadcast %37 : vector<1x320xf32> to vector<3x320xf32>
    %42 = vector.broadcast %40 : vector<3x1xf32> to vector<3x320xf32>
    %43 = arith.minimumf %41, %42 : vector<3x320xf32>
    %cst_15 = arith.constant 5.000000e-01 : f32
    %44 = vector.broadcast %cst_15 : f32 to vector<1x320xf32>
    %45 = arith.mulf %20, %44 : vector<1x320xf32>
    %46 = arith.subf %9, %45 : vector<1x320xf32>
    %cst_16 = arith.constant 5.000000e-01 : f32
    %47 = vector.broadcast %cst_16 : f32 to vector<3x1xf32>
    %48 = arith.mulf %33, %47 : vector<3x1xf32>
    %49 = arith.subf %31, %48 : vector<3x1xf32>
    %50 = vector.broadcast %46 : vector<1x320xf32> to vector<3x320xf32>
    %51 = vector.broadcast %49 : vector<3x1xf32> to vector<3x320xf32>
    %52 = arith.maximumf %50, %51 : vector<3x320xf32>
    %53 = arith.subf %43, %52 : vector<3x320xf32>
    %cst_17 = arith.constant 0.000000e+00 : f32
    %54 = vector.broadcast %cst_17 : f32 to vector<3x320xf32>
    %55 = arith.maximumf %53, %54 : vector<3x320xf32>
    %cst_18 = arith.constant 5.000000e-01 : f32
    %56 = vector.broadcast %cst_18 : f32 to vector<1x320xf32>
    %57 = arith.mulf %26, %56 : vector<1x320xf32>
    %58 = arith.addf %14, %57 : vector<1x320xf32>
    %cst_19 = arith.constant 5.000000e-01 : f32
    %59 = vector.broadcast %cst_19 : f32 to vector<3x1xf32>
    %60 = arith.mulf %34, %59 : vector<3x1xf32>
    %61 = arith.addf %32, %60 : vector<3x1xf32>
    %62 = vector.broadcast %58 : vector<1x320xf32> to vector<3x320xf32>
    %63 = vector.broadcast %61 : vector<3x1xf32> to vector<3x320xf32>
    %64 = arith.minimumf %62, %63 : vector<3x320xf32>
    %cst_20 = arith.constant 5.000000e-01 : f32
    %65 = vector.broadcast %cst_20 : f32 to vector<1x320xf32>
    %66 = arith.mulf %26, %65 : vector<1x320xf32>
    %67 = arith.subf %14, %66 : vector<1x320xf32>
    %cst_21 = arith.constant 5.000000e-01 : f32
    %68 = vector.broadcast %cst_21 : f32 to vector<3x1xf32>
    %69 = arith.mulf %34, %68 : vector<3x1xf32>
    %70 = arith.subf %32, %69 : vector<3x1xf32>
    %71 = vector.broadcast %67 : vector<1x320xf32> to vector<3x320xf32>
    %72 = vector.broadcast %70 : vector<3x1xf32> to vector<3x320xf32>
    %73 = arith.maximumf %71, %72 : vector<3x320xf32>
    %74 = arith.subf %64, %73 : vector<3x320xf32>
    %cst_22 = arith.constant 0.000000e+00 : f32
    %75 = vector.broadcast %cst_22 : f32 to vector<3x320xf32>
    %76 = arith.maximumf %74, %75 : vector<3x320xf32>
    %77 = arith.mulf %55, %76 : vector<3x320xf32>
    %78 = arith.mulf %20, %26 : vector<1x320xf32>
    %79 = arith.mulf %33, %34 : vector<3x1xf32>
    %80 = vector.broadcast %78 : vector<1x320xf32> to vector<3x320xf32>
    %81 = vector.broadcast %79 : vector<3x1xf32> to vector<3x320xf32>
    %82 = arith.addf %80, %81 : vector<3x320xf32>
    %83 = arith.subf %82, %77 : vector<3x320xf32>
    %cst_23 = arith.constant 0.000000e+00 : f32
    %84 = vector.broadcast %cst_23 : f32 to vector<3x320xf32>
    %85 = arith.cmpf ogt, %83, %84 : vector<3x320xf32>
    %cst_24 = arith.constant 0.000000e+00 : f32
    %86 = vector.broadcast %cst_24 : f32 to vector<3x320xf32>
    %87 = arith.cmpf ogt, %83, %86 : vector<3x320xf32>
    %cst_25 = arith.constant 1.000000e+00 : f32
    %88 = vector.broadcast %cst_25 : f32 to vector<3x320xf32>
    %89 = arith.select %87, %83, %88 : vector<3x320xi1>, vector<3x320xf32>
    %90 = arith.divf %77, %89 : vector<3x320xf32>
    %cst_26 = arith.constant 0.000000e+00 : f32
    %91 = vector.broadcast %cst_26 : f32 to vector<3x320xf32>
    %92 = arith.select %85, %90, %91 : vector<3x320xi1>, vector<3x320xf32>
    %cst_27 = arith.constant dense<0xFF800000> : vector<320xf32>
    %93 = vector.multi_reduction <maximumf>, %92, %cst_27 [0] : vector<3x320xf32> to vector<320xf32>
    %94 = vector.shape_cast %93 : vector<320xf32> to vector<1x320xf32>
    %95 = vector.extract_strided_slice %1 {offsets = [4, 0], sizes = [1, 320], strides = [1, 1]} : vector<25x320xf32> to vector<1x320xf32>
    %cst_28 = arith.constant 6.000000e-01 : f32
    %96 = vector.broadcast %cst_28 : f32 to vector<1x320xf32>
    %97 = arith.cmpf ogt, %94, %96 : vector<1x320xf32>
    %cst_29 = arith.constant 0.000000e+00 : f32
    %98 = vector.broadcast %cst_29 : f32 to vector<1x320xf32>
    %99 = arith.subf %98, %95 : vector<1x320xf32>
    %cst_30 = arith.constant 1.000000e+00 : f32
    %100 = vector.broadcast %cst_30 : f32 to vector<1x320xf32>
    %101 = arith.mulf %100, %99 : vector<1x320xf32>
    %cst_31 = arith.constant 0.000000e+00 : f32
    %102 = vector.broadcast %cst_31 : f32 to vector<1x320xf32>
    %103 = arith.select %97, %102, %101 : vector<1x320xi1>, vector<1x320xf32>
    %c0_32 = arith.constant 0 : index
    %c0_33 = arith.constant 0 : index
    %c0_34 = arith.constant 0 : index
    %104 = vector.load %arg5[%c0_32, %c0_33, %c0_34] : memref<1x1x320xf32, #tpu.memory_space<vmem>>, vector<1x1x320xf32>
    %105 = vector.shape_cast %104 : vector<1x1x320xf32> to vector<1x320xf32>
    %106 = vector.shape_cast %103 : vector<1x320xf32> to vector<1x1x320xf32>
    tpu.vector_store %arg5[%c0_32, %c0_33, %c0_34], %106 {strides = array<i32>} : memref<1x1x320xf32, #tpu.memory_space<vmem>>, vector<1x1x320xf32>,
    return
  }
  func.func @transform_0(%arg0: i32) -> (i32, i32, i32) {
    %c0_i32 = arith.constant 0 : i32
    %c0_i32_0 = arith.constant 0 : i32
    %c0_i32_1 = arith.constant 0 : i32
    return %arg0, %c0_i32, %c0_i32_0 : i32, i32, i32
  }
  func.func @transform_1(%arg0: i32) -> (i32, i32) {
    %c0_i32 = arith.constant 0 : i32
    %c0_i32_0 = arith.constant 0 : i32
    %c0_i32_1 = arith.constant 0 : i32
    return %c0_i32, %c0_i32_0 : i32, i32
  }
  func.func @transform_2(%arg0: i32) -> (i32, i32, i32) {
    %c0_i32 = arith.constant 0 : i32
    %c0_i32_0 = arith.constant 0 : i32
    %c0_i32_1 = arith.constant 0 : i32
    return %arg0, %c0_i32, %c0_i32_0 : i32, i32, i32
  }
  func.func @transform_3(%arg0: i32) -> (i32, i32, i32) {
    %c0_i32 = arith.constant 0 : i32
    %c0_i32_0 = arith.constant 0 : i32
    %c0_i32_1 = arith.constant 0 : i32
    return %arg0, %c0_i32, %c0_i32_0 : i32, i32, i32
  }
  func.func @transform_4(%arg0: i32) -> (i32, i32, i32) {
    %c0_i32 = arith.constant 0 : i32
    %c0_i32_0 = arith.constant 0 : i32
    %c0_i32_1 = arith.constant 0 : i32
    return %arg0, %c0_i32, %c0_i32_0 : i32, i32, i32
  }
}

</mosaic_0001>

<bundles_post_ra>
// kernel: tpu_custom_call.1
= control target key start
LH: loop header
LB: loop body
LE: loop exit
PB: predicated region body
PF: predicated region fallthrough
CT: control target
= control target key end

     0   :  { %10 = vsyncpa [#allocation3], 0  ;;  %s1311_s0 = inlined_call_operand.vmem [shape: f32[2,25,320], index: 0, kind: input, shape index: {}]   ;;  %s1312_s1 = inlined_call_operand.vmem [shape: f32[4,320], index: 1, kind: input, shape index: {}]   ;;  %s1313_s2 = inlined_call_operand.vmem [shape: f32[2,3,4], index: 2, kind: input, shape index: {}]   ;;  %s1314_s3 = inlined_call_operand.hbm [shape: f32[2,4,320], index: 3, kind: output, shape index: {0}]   ;;  %s1315_s4 = inlined_call_operand.hbm [shape: f32[2,1,320], index: 4, kind: output, shape index: {1}]  }
   0x1   :  { %12 = vsyncpa [#allocation3 + $0x1], 0 }
   0x2   :  { %13 = vsyncpa [#allocation5], 0 }
   0x3   :  { %15 = vsyncpa [#allocation5 + $0x1], 0  ;;  %s996_s15 = smov 0   ;;  %s998_s16 = smov 0  }
   0x4   :  { %s1000_s17 = smov 0   ;;  %s1002_s18 = smov 0  }
   0x5 LB: > { %s1017_s19 = sadd.s32 4294967295, %s961_s18   ;;  %s782_s20 = sadd.s32 4294967294, %s961_s18   ;;  %s961_s18 = sphi %s1002_s18, %s1321_s18   ;;  %s957_s17 = sphi %s1000_s17, %s1320_s17   ;;  %s953_s16 = sphi %s998_s16, %s1319_s16   ;;  %s949_s15 = sphi %s996_s15, %s1318_s15  }
   0x6   : > { %s1021_s21 = sadd.s32 1, %s961_s18   ;;  %s101_s22 = sadd.s32 1, %s957_s17 }
   0x7   : > { %s98_s23 = ssub.s32 %s961_s18, %s1021_s21  ;;  %p111_p0 = scmp.ne.s32.totalorder %s957_s17, %s953_s16 }
   0x8   : > { %p99_p1 = scmp.eq.s32.totalorder %s98_s23, 0  ;;  %p112_p2 = scmp.eq.s32.totalorder %s1017_s19, 1 }
   0x9   : > { %p117_p3 = scmp.ne.s32.totalorder %s953_s16, %s949_s15  ;;  %p118_p4 = scmp.eq.s32.totalorder %s782_s20, 1 }
   0xa   : > { %s1032_s24 = scalar_select %p99_p1, %s957_s17, %s101_s22  }
   0xb   : > { %p1034_p5 = por %p112_p2, %p111_p0  ;;  %p1038_p6 = por %p118_p4, %p117_p3 }
   0xc   : > { %p785_p7 = scmp.ge.s32.totalorder %s961_s18, 1  ;;  %p180_p8 = scmp.lt.s32.totalorder %s961_s18, 3 }
   0xe   : > { %p181_p9 = pnand %p785_p7, %p180_p8 }
   0xf   : > { %p215_p10 = scmp.lt.s32.totalorder (!%p181_p9), %s1017_s19, 1  ;;  %v963_v0 = vmov (!%p181_p9), 1   ;;  %v964_v1 = vmov (!%p181_p9), 0   ;;  %s965_s6 = smov (!%p181_p9), 126   ;;  %v227_v14 = vld [vmem:[%s1312_s1] sm:$0xff] (!%p181_p9)  ;;  %v254_v19 = vlaneseq (!%p181_p9)  ;;  %v967_v61 = vmov (!%p181_p9), 2  }
  0x10   : > { %184 = sbr.rel (%p181_p9) target bundleno = 349 (0x15d), region = 32  ;;  %850 = vset.pattern.permute.xlu0 (!%p181_p9), %v963_v0  ;;  %849 = vset.pattern.permute.xlu1 (!%p181_p9), %v964_v1  ;;  %s966_s7 = smov (!%p181_p9), 127   ;;  %v228_v15 = vld [vmem:[%s1312_s1 + $0x8] sm:$0xf] (!%p181_p9)  ;;  %vm324_vm0 = vcmask (!%p181_p9), 1042432   ;;  %vm316_vm1 = vcmask (!%p181_p9), 1040384  }
  0x11   : > { %v1079_v23 = vshrl.u32 (!%p181_p9), %v254_v19, 7  ;;  %s1175_s22 = sand.u32 (!%p181_p9), 1, %s953_s16   ;;  %vm320_vm2 = vcmask (!%p181_p9), 1041408   ;;  %vm333_vm3 = vcmask (!%p181_p9), 519168   ;;  %s968_s9 = smov (!%p181_p9), [#allocation2]  }
  0x12   : > { %s794_s23 = smul.u32 (!%p181_p9), 12, %s1175_s22  ;;  %s871_s10 = sshll.u32 (!%p181_p9), %s968_s9, 4  ;;  %s872_s10 = int_to_ptr.vmem [resolvable:$false] %s871_s10 }
  0x13   : > { %v1087_v30 = vsub.s32 (!%p181_p9), 0, %v1079_v23  ;;  %v1090_v31 = vsub.s32 (!%p181_p9), 4, %v1079_v23  ;;  %v1097_v37 = vsub.s32 (!%p181_p9), 1, %v1079_v23  ;;  %v1100_v38 = vsub.s32 (!%p181_p9), 5, %v1079_v23 }
  0x17   : > { %s216_s27 = scalar_select %p215_p10, %s1017_s19, 1 }
  0x19   : > { %s787_s28 = sshll.u32 %s216_s27, 2  ;;  %s796_s8 = smul.u32 96, %s216_s27 }
  0x1a   : > { %s223_s5 = scalar_lea.vmem %s1313_s2, %s787_s28  ;;  %s797_s27 = smul.u32 192, %s1017_s19 }
  0x1b   : > { %v1050_v2 = vld [vmem:[%s223_s5] sm:$0x7]  ;;  %s219_s11 = scalar_lea.vmem %s1311_s0, %s796_s8  ;;  %s207_s28 = scalar_lea.vmem [#allocation2], %s794_s23 }
  0x1c   : > { %v347_v3 = vmul.f32 0.5, %v1050_v2  ;;  %v1057_v4 = vld [vmem:[%s219_s11] sm:$0xff]  ;;  %v1059_v5 = vld [vmem:[%s219_s11 + $0x8] sm:$0xff]  ;;  %v1063_v8 = vld [vmem:[%s219_s11 + $0x10] sm:$0xff]  ;;  %s665_s29 = sshll.u32 %s207_s28, 4  ;;  %s873_s11 = scalar_lea.vmem %s872_s10, 384  ;;  %s1204_s29 = int_to_ptr.vmem [resolvable:$true] %s665_s29 }
  0x1d   : > { %v238_v6 = vmul.f32 1.442695, %v1057_v4  ;;  %v240_v7 = vmul.f32 1.442695, %v1059_v5  ;;  %v242_v9 = vmul.f32 1.442695, %v1063_v8  ;;  %v232_v18 = vcombine.low %v1057_v4, %v1059_v5  ;;  %p874_p0 = scmp.lt.s32.totalorder %s1204_s29, %s872_s10 }
  0x1e   : > { %349 = vrot.lane.b32.xlu0 %v347_v3, %s965_s6  ;;  %v235_v24 = vadd.f32 %v228_v15, %v1063_v8  ;;  %s1202_s6 = scalar_lea.hbm %s1314_s3, %s797_s27  ;;  %s867_s8 = scalar_lea.vmem %s1204_s29, 192 }
  0x1f   : > { %855 = vpow2.f32 %v238_v6  ;;  %v234_v22 = vadd.f32 %v232_v18, %v227_v14  ;;  %p868_p11 = scmp.ne.s32.totalorder %s1204_s29, %s867_s8  ;;  %p875_p1 = scmp.lt.s32.totalorder %s873_s11, %s867_s8 }
  0x20   : > { %857 = vpow2.f32 %v240_v7  ;;  %v1092_v32 = vmul.f32 0.125, %v235_v24 }
  0x21   : > { %859 = vpow2.f32 %v242_v9  ;;  %v1084_v27 = vmul.f32 0.125, %v234_v22  ;;  %p869_p12 = pnand %p868_p11, %p1034_p5  ;;  %p876_p2 = por %p875_p1, %p874_p0 }
  0x22   : > { %522 = vrot.lane.b32.xlu0 %v1050_v2, %s966_s7  ;;  %v265_v24 = vrot.slane %v1092_v32, %v1087_v30  ;;  %s646_s7 = scalar_lea.sflag [#allocation3], %s1175_s22 }
  0x23   : > { %v257_v22 = vrot.slane %v1084_v27, %v1087_v30  ;;  %p870_p13 = pneg %p869_p12 }
  0x25   : > { %p877_p3 = pnand %p876_p2, %p870_p13 }
  0x29   : > { %v856_v10 = vpop.eup %855 }
  0x2a   : > { %v858_v11 = vpop.eup %857 }
  0x2b   : > { %v246_v12 = vcombine.low %v856_v10, %v858_v11  ;;  %v860_v13 = vpop.eup %859 }
  0x2c   : > { %v249_v17 = vmul.f32 %v860_v13, %v228_v15  ;;  %v292_v13 = vsub.s32 6, %v1079_v23 }
  0x2d   : > { %v248_v16 = vmul.f32 %v246_v12, %v227_v14 }
  0x2e   : > { %v1076_v21 = vmul.f32 0.125, %v249_v17  ;;  %v261_v17 = vrot.slane %v1084_v27, %v1090_v31 }
  0x2f   : > { %v1074_v20 = vmul.f32 0.125, %v248_v16 }
  0x30   : > { %v336_v26 = vmul.f32 0.5, %v1076_v21 }
  0x31   : > { %v335_v25 = vmul.f32 0.5, %v1074_v20  ;;  %v788_v11 = vrot.slane %v1074_v20, 9  ;;  %v293_v18 = vrot.slane %v1074_v20, %v292_v13 }
  0x32   : > { %v341_v29 = vrot.slane %v336_v26, 6  ;;  %v280_v26 = vrot.slane %v1092_v32, %v1097_v37 }
  0x33   : > { %v339_v28 = vrot.slane %v335_v25, 6  ;;  %v1159_v14 = vmul.f32 %v788_v11, %v1074_v20  ;;  %v272_v25 = vrot.slane %v1084_v27, %v1097_v37 }
  0x34   : > { %v342_v34 = vrot.slane %v341_v29, 4 }
  0x35   : > { %v340_v33 = vrot.slane %v339_v28, 4  ;;  %v1165_v15 = vrot.slane %v1159_v14, %v292_v13 }
  0x36   : > { %v346_v36 = vadd.f32 %v342_v34, %v1092_v32  ;;  %v391_v54 = vsub.f32 %v1092_v32, %v342_v34  ;;  %v317_v34 = vsel %vm316_vm1, %v257_v22, %v272_v25 }
  0x37   : > { %v345_v35 = vadd.f32 %v340_v33, %v1084_v27  ;;  %v390_v53 = vsub.f32 %v1084_v27, %v340_v33  ;;  %v307_v33 = vsub.s32 7, %v1079_v23 }
  0x38   : > { %v366_v41 = vrot.slane %v346_v36, %v1087_v30  ;;  %v447_v45 = vrot.slane %v346_v36, %v1097_v37  ;;  %v406_v58 = vrot.slane %v391_v54, %v1087_v30  ;;  %v481_v3 = vrot.slane %v391_v54, %v1097_v37 }
  0x39   : > { %v358_v39 = vrot.slane %v345_v35, %v1087_v30  ;;  %v362_v40 = vrot.slane %v345_v35, %v1090_v31  ;;  %v439_v42 = vrot.slane %v345_v35, %v1097_v37  ;;  %v443_v44 = vrot.slane %v345_v35, %v1100_v38 }
  0x3a   : > { %v1116_v49 = vrot.slane %v366_v41, %v1087_v30  ;;  %v1125_v52 = vrot.slane %v447_v45, %v1097_v37  ;;  %v398_v56 = vrot.slane %v390_v53, %v1087_v30  ;;  %v402_v57 = vrot.slane %v390_v53, %v1090_v31 }
  0x3b   : > { %v1110_v47 = vrot.slane %v358_v39, %v1087_v30  ;;  %v1113_v48 = vrot.slane %v362_v40, %v1087_v30  ;;  %v1119_v50 = vrot.slane %v439_v42, %v1097_v37  ;;  %v1122_v51 = vrot.slane %v443_v44, %v1097_v37 }
  0x3c   : > { %v1134_v59 = vrot.slane %v398_v56, %v1087_v30  ;;  %v1137_v60 = vrot.slane %v402_v57, %v1087_v30  ;;  %v1140_v62 = vrot.slane %v406_v58, %v1087_v30  ;;  %v473_v63 = vrot.slane %v390_v53, %v1097_v37 }
  0x3d   : > { %v477_v1 = vrot.slane %v390_v53, %v1100_v38  ;;  %v1153_v10 = vrot.slane %v481_v3, %v1097_v37  ;;  %v303_v31 = vsub.s32 3, %v1079_v23  ;;  %v319_v36 = vsel %vm316_vm1, %v265_v24, %v280_v26 }
  0x3e   : > { %v1147_v7 = vrot.slane %v473_v63, %v1097_v37 }
  0x3f   : > { %v1150_v9 = vrot.slane %v477_v1, %v1097_v37  ;;  %v304_v30 = vrot.slane %v1074_v20, %v303_v31  ;;  %v312_v32 = vrot.slane %v1076_v21, %v303_v31 }
  0x90   : > { %v350_v43 = vpop.permute.xlu0 %349 }
  0x91   : > { %v352_v46 = vadd.f32 %v350_v43, %v1050_v2  ;;  %v392_v55 = vsub.f32 %v1050_v2, %v350_v43 }
  0x93   : > { %464 = vperm.xlu0 %850, %v352_v46   ;;  %384 = vperm.xlu1 %849, %v352_v46  }
  0x94   : > { %v523_v6 = vpop.permute.xlu0 %522 }
  0x95   : > { %v525_v12 = vmul.f32 %v523_v6, %v1050_v2  ;;  %v276_v2 = vrot.slane %v1084_v27, %v1100_v38  ;;  %v308_v27 = vrot.slane %v1074_v20, %v307_v33 }
  0x97   : > { %424 = vperm.xlu1 %849, %v392_v55   ;;  %853 = vset.pattern.permute.xlu0 %v967_v61  ;;  %v318_v35 = vsel %vm316_vm1, %v261_v17, %v276_v2 }
  0x98   : > { %v322_v38 = vsel %vm320_vm2, %v318_v35, %v293_v18 }
  0x99   : > { %v326_v41 = vsel %vm324_vm0, %v322_v38, %v308_v27 }
  0x9b   : > { %851 = vset.pattern.permute.xlu1 %v963_v0  ;;  %v1162_v0 = vsub.s32 2, %v1079_v23 }
  0x9c   : > { %498 = vperm.xlu1 %851, %v392_v55  }
  0x9d   : > { %v550_v16 = vrot.slane %v1165_v15, %v1162_v0  ;;  %v289_v28 = vrot.slane %v1074_v20, %v1162_v0  ;;  %v297_v29 = vrot.slane %v1076_v21, %v1162_v0 }
  0x9f   : > { %v321_v37 = vsel %vm320_vm2, %v317_v34, %v289_v28  ;;  %v323_v39 = vsel %vm320_vm2, %v319_v36, %v297_v29 }
  0xa0   : > { %852 = vset.pattern.permute.xlu1 %v967_v61  ;;  %v325_v40 = vsel %vm324_vm0, %v321_v37, %v304_v30  ;;  %v327_v20 = vsel %vm324_vm0, %v323_v39, %v312_v32 }
  0xa1   : > { %557 = vperm.xlu1 %852, %v525_v12   ;;  %v330_v42 = vcombine.low %v325_v40, %v326_v41  ;;  %334 = vst.msk [vmem:[%s207_s28 + $0x8] sm:$0xf] %vm333_vm3, %v327_v20 }
  0xa3   : > { %332 = vst [vmem:[%s207_s28] sm:$0xff] %v330_v42 }
  0xa4   : > { %880 = shalt.err (!%p877_p3)
}
  0xa5   : > { %s881_s12 = scalar_lea.hbm %s1202_s6, 192  ;;  %s885_s20 = scalar_lea.hbm %s1314_s3, 384 }
  0xa6   : > { %p882_p4 = scmp.ne.s32.totalorder %s1202_s6, %s881_s12  ;;  %p886_p9 = scmp.lt.u32.totalorder %s1202_s6, %s1314_s3 }
  0xa7   : > { %p887_p10 = scmp.lt.u32.totalorder %s885_s20, %s881_s12  ;;  %p889_p12 = scmp.lt.u32.totalorder %s881_s12, %s1202_s6 }
  0xa8   : > { %p883_p7 = pnand %p882_p4, %p1034_p5 }
  0xa9   : > { %p888_p11 = por %p887_p10, %p886_p9 }
  0xaa   : > { %p884_p8 = pneg %p883_p7 }
  0xab   : > { %p890_p13 = por %p889_p12, %p888_p11 }
  0xad   : > { %p891_p0 = pnand %p890_p13, %p884_p8 }
  0xaf   : > { %894 = shalt.err (!%p891_p0)
}
  0xb0   : > { %799 = dma.vmem_to_hbm [thread:$0]  (%p1034_p5), %s1204_s29, 192, %s1202_s6, %s646_s7   ;;  %v789_v43 = vrot.slane %v1076_v21, 9  ;;  %v531_v63 = vrot.slane %v1159_v14, %v1162_v0  ;;  %vm595_vm7 = vcmask 518144   ;;  %vm642_vm11 = vcmp.lt.s32.totalorder %v254_v19, 320 }
  0xb1   : > { %s795_s28 = smul.u32 3, %s1175_s22  ;;  %s651_s9 = scalar_lea.sflag [#allocation5], %s1175_s22 }
  0xb2   : > { %v520_v45 = vmul.f32 %v789_v43, %v1076_v21  ;;  %v546_v12 = vrot.slane %v531_v63, %v1162_v0  ;;  %s798_s29 = smul.u32 48, %s1017_s19  ;;  %s970_s19 = smov [#allocation4]  }
  0xb3   : > { %s214_s30 = scalar_lea.vmem [#allocation4], %s795_s28  ;;  %s899_s11 = sshll.u32 %s970_s19, 4  ;;  %s900_s11 = int_to_ptr.vmem [resolvable:$false] %s899_s11 }
  0xb4   : > { %s679_s5 = sshll.u32 %s214_s30, 4  ;;  %s1268_s8 = scalar_lea.hbm %s1315_s4, %s798_s29  ;;  %s1270_s5 = int_to_ptr.vmem [resolvable:$true] %s679_s5 }
  0xb5   : > { %s895_s10 = scalar_lea.vmem %s1270_s5, 48  ;;  %s901_s12 = scalar_lea.vmem %s900_s11, 96 }
  0xb6   : > { %p896_p1 = scmp.ne.s32.totalorder %s1270_s5, %s895_s10  ;;  %p902_p4 = scmp.lt.s32.totalorder %s1270_s5, %s900_s11 }
  0xb7   : > { %p903_p7 = scmp.lt.s32.totalorder %s901_s12, %s895_s10 }
  0xb8   : > { %p897_p2 = pnand %p896_p1, %p1034_p5 }
  0xb9   : > { %p904_p8 = por %p903_p7, %p902_p4 }
  0xba   : > { %p898_p3 = pneg %p897_p2 }
  0xbc   : > { %p905_p9 = pnand %p904_p8, %p898_p3 }
 0x112   : > { %v385_v44 = vpop.permute.xlu1 %384  ;;  %v465_v61 = vpop.permute.xlu0 %464 }
 0x113   : > { %v387_v46 = vmin.f32 %v1110_v47, %v385_v44  ;;  %v388_v53 = vmin.f32 %v1113_v48, %v385_v44  ;;  %v389_v55 = vmin.f32 %v1116_v49, %v385_v44  ;;  %v539_v47 = vrot.slane %v520_v45, %v1162_v0 }
 0x114   : > { %v467_v48 = vmin.f32 %v1119_v50, %v465_v61  ;;  %v468_v6 = vmin.f32 %v1122_v51, %v465_v61 }
 0x115   : > { %v554_v13 = vrot.slane %v539_v47, %v1162_v0 }
 0x116   : > { %v425_v54 = vpop.permute.xlu1 %424 }
 0x117   : > { %v427_v56 = vmax.f32 %v1134_v59, %v425_v54  ;;  %v428_v57 = vmax.f32 %v1137_v60, %v425_v54  ;;  %v429_v58 = vmax.f32 %v1140_v62, %v425_v54  ;;  %v469_v59 = vmin.f32 %v1125_v52, %v465_v61 }
 0x119   : > { %v430_v1 = vsub.f32 %v387_v46, %v427_v56  ;;  %v431_v3 = vsub.f32 %v388_v53, %v428_v57  ;;  %v432_v21 = vsub.f32 %v389_v55, %v429_v58  ;;  %v969_v57 = vmov 1966171168  }
 0x11a   : > { %v618_v58 = vunpack.c.l.s4 %v969_v57 }
 0x11b   : > { %v499_v49 = vpop.permute.xlu1 %498  ;;  %v433_v18 = vmax.f32 %v430_v1, 0.0  ;;  %v434_v50 = vmax.f32 %v431_v3, 0.0  ;;  %v435_v22 = vmax.f32 %v432_v21, 0.0 }
 0x11c   : > { %v501_v60 = vmax.f32 %v1147_v7, %v499_v49  ;;  %v502_v62 = vmax.f32 %v1150_v9, %v499_v49  ;;  %v503_v11 = vmax.f32 %v1153_v10, %v499_v49 }
 0x11e   : > { %v504_v14 = vsub.f32 %v467_v48, %v501_v60  ;;  %v505_v17 = vsub.f32 %v468_v6, %v502_v62  ;;  %v506_v2 = vsub.f32 %v469_v59, %v503_v11  ;;  %v606_v48 = vsub.f32 0.0, %v1057_v4 }
 0x11f   : > { %v619_v6 = vunpack.c.0.s8 %v618_v58  ;;  %v607_v60 = vsub.f32 0.0, %v1059_v5  ;;  %v608_v11 = vsub.f32 0.0, %v1063_v8 }
 0x120   : > { %v507_v51 = vmax.f32 %v504_v14, 0.0  ;;  %v508_v24 = vmax.f32 %v505_v17, 0.0  ;;  %v509_v25 = vmax.f32 %v506_v2, 0.0  ;;  %v558_v52 = vpop.permute.xlu1 %557 }
 0x121   : > { %v560_v26 = vadd.f32 %v558_v52, %v546_v12  ;;  %v561_v7 = vadd.f32 %v558_v52, %v550_v16  ;;  %v562_v9 = vadd.f32 %v558_v52, %v554_v13  ;;  %v622_v14 = vsub.s32 %v619_v6, %v1079_v23 }
 0x122   : > { %v510_v10 = vmul.f32 %v507_v51, %v433_v18  ;;  %v511_v28 = vmul.f32 %v508_v24, %v434_v50  ;;  %v512_v29 = vmul.f32 %v509_v25, %v435_v22 }
 0x124   : > { %v563_v31 = vsub.f32 %v560_v26, %v510_v10  ;;  %v564_v33 = vsub.f32 %v561_v7, %v511_v28  ;;  %v565_v30 = vsub.f32 %v562_v9, %v512_v29 }
 0x126   : > { %vm566_vm4 = vcmp.gt.f32.partialorder %v563_v31, 0.0  ;;  %vm567_vm5 = vcmp.gt.f32.partialorder %v564_v33, 0.0  ;;  %vm568_vm6 = vcmp.gt.f32.partialorder %v565_v30, 0.0 }
 0x127   : > { %v569_v27 = vsel %vm566_vm4, %v563_v31, 1.0  ;;  %v570_v32 = vsel %vm567_vm5, %v564_v33, 1.0  ;;  %v571_v34 = vsel %vm568_vm6, %v565_v30, 1.0 }
 0x128   : > { %861 = vrcp.f32 %v569_v27 }
 0x129   : > { %863 = vrcp.f32 %v570_v32 }
 0x12a   : > { %865 = vrcp.f32 %v571_v34 }
 0x132   : > { %v862_v0 = vpop.eup %861 }
 0x133   : > { %v864_v15 = vpop.eup %863  ;;  %v573_v16 = vmul.f32 %v862_v0, %v510_v10 }
 0x134   : > { %v866_v35 = vpop.eup %865  ;;  %v575_v36 = vmul.f32 %v864_v15, %v511_v28 }
 0x135   : > { %v577_v37 = vmul.f32 %v866_v35, %v512_v29  ;;  %v578_v38 = vsel %vm566_vm4, %v573_v16, 0.0 }
 0x136   : > { %v579_v39 = vsel %vm567_vm5, %v575_v36, 0.0  ;;  %v581_v40 = vsel %vm324_vm0, %v578_v38, -inf }
 0x137   : > { %v580_v41 = vsel %vm568_vm6, %v577_v37, 0.0  ;;  %v582_v20 = vrot.slane %v581_v40, 4  ;;  %v588_v42 = vsel %vm324_vm0, %v579_v39, -inf }
 0x138   : > { %v589_v43 = vrot.slane %v588_v42, 4  ;;  %v596_v44 = vsel %vm595_vm7, %v580_v41, -inf }
 0x139   : > { %v583_v45 = vmax.f32 %v581_v40, %v582_v20  ;;  %v597_v46 = vrot.slane %v596_v44, 4 }
 0x13a   : > { %v590_v53 = vmax.f32 %v588_v42, %v589_v43 }
 0x13b   : > { %v584_v54 = vrot.slane %v583_v45, 2  ;;  %v598_v55 = vmax.f32 %v596_v44, %v597_v46 }
 0x13c   : > { %v591_v56 = vrot.slane %v590_v53, 2 }
 0x13d   : > { %v585_v61 = vmax.f32 %v583_v45, %v584_v54  ;;  %v599_v63 = vrot.slane %v598_v55, 2 }
 0x13e   : > { %v592_v1 = vmax.f32 %v590_v53, %v591_v56 }
 0x13f   : > { %v586_v3 = vrot.slane %v585_v61, 1  ;;  %v600_v21 = vmax.f32 %v598_v55, %v599_v63 }
 0x140   : > { %v593_v47 = vrot.slane %v592_v1, 1 }
 0x141   : > { %v587_v49 = vmax.f32 %v585_v61, %v586_v3  ;;  %v601_v59 = vrot.slane %v600_v21, 1 }
 0x142   : > { %v594_v62 = vmax.f32 %v592_v1, %v593_v47 }
 0x143   : > { %v602_v12 = vmax.f32 %v600_v21, %v601_v59  ;;  %vm603_vm8 = vcmp.gt.f32.partialorder %v587_v49, 0.6 }
 0x144   : > { %vm604_vm9 = vcmp.gt.f32.partialorder %v594_v62, 0.6  ;;  %v609_v13 = vsel %vm603_vm8, 0.0, %v606_v48 }
 0x145   : > { %vm605_vm10 = vcmp.gt.f32.partialorder %v602_v12, 0.6  ;;  %v610_v17 = vsel %vm604_vm9, 0.0, %v607_v60 }
 0x146   : > { %v611_v4 = vsel %vm605_vm10, 0.0, %v608_v11  ;;  %v615_v2 = vcombine.high %v609_v13, %v610_v17 }
 0x147   : > { %v616_v18 = vcombine.high %v611_v4, %v611_v4 }
 0x148   : > { %v623_v50 = vrot.slane %v615_v2, %v622_v14 }
 0x149   : > { %v630_v5 = vrot.slane %v616_v18, %v622_v14 }
 0x14b   : > { %v631_v8 = vcombine.low %v623_v50, %v630_v5 }
 0x14d   : > { %v638_v22 = vrot.slane %v631_v8, %v622_v14 }
 0x14f   : > { %644 = vst.msk [vmem:[%s214_s30] sm:$0x7] %vm642_vm11, %v638_v22 }
 0x150   : > { %908 = shalt.err (!%p905_p9)
}
 0x151   : > { %s909_s22 = scalar_lea.hbm %s1268_s8, 48  ;;  %s913_s20 = scalar_lea.hbm %s1315_s4, 96 }
 0x152   : > { %p910_p10 = scmp.ne.s32.totalorder %s1268_s8, %s909_s22  ;;  %p914_p13 = scmp.lt.u32.totalorder %s1268_s8, %s1315_s4 }
 0x153   : > { %p915_p0 = scmp.lt.u32.totalorder %s913_s20, %s909_s22  ;;  %p917_p2 = scmp.lt.u32.totalorder %s909_s22, %s1268_s8 }
 0x154   : > { %p911_p11 = pnand %p910_p10, %p1034_p5 }
 0x155   : > { %p916_p1 = por %p915_p0, %p914_p13 }
 0x156   : > { %p912_p12 = pneg %p911_p11 }
 0x157   : > { %p918_p3 = por %p917_p2, %p916_p1 }
 0x159   : > { %p919_p4 = pnand %p918_p3, %p912_p12 }
 0x15b   : > { %922 = shalt.err (!%p919_p4)
}
 0x15c   : > { %800 = dma.vmem_to_hbm [thread:$0]  (%p1034_p5), %s1270_s5, 48, %s1268_s8, %s651_s9  }
 0x15d PF: > { %p810_p7 = scmp.ge.s32.totalorder %s961_s18, 2  ;;  %s691_s28 = sand.u32 1, %s949_s15  }
 0x15e   : > { %s692_s29 = scalar_lea.sflag [#allocation3], %s691_s28 }
 0x15f   : > { %p804_p8 = pnand %p810_p7, %p1038_p6 }
 0x161   : > { %940 = dma.done.wait (!%p804_p8), %s692_s29, 192  }
 0x162   : > { %942 = vsyncadd (!%p804_p8), %s692_s29, 4294967104  ;;  %s701_s30 = scalar_lea.sflag [#allocation5], %s691_s28 }
 0x163   : > { %944 = dma.done.wait (!%p804_p8), %s701_s30, 48  }
 0x164   : > { %946 = vsyncadd (!%p804_p8), %s701_s30, 4294967248  ;;  %p18_p5 = scmp.ge.s32.totalorder %s1021_s21, 4   ;;  %s1318_s15 = smov %s953_s16 }
 0x165   : > { %s1319_s16 = smov %s957_s17  ;;  %s1320_s17 = smov %s1032_s24 }
 0x166   : > { %s1321_s18 = smov %s1021_s21  ;;  %20 = sbr.rel (!%p18_p5) target bundleno = 5 (0x5), region = 87 }
 0x16d   :  { %706 = vsyncpa [#allocation3], 1 }
 0x16e   :  { %708 = vsyncpa [#allocation3 + $0x1], 1 }
 0x16f   :  { %709 = vsyncpa [#allocation5], 1 }
 0x170   :  { %711 = vsyncpa [#allocation5 + $0x1], 1 }

</bundles_post_ra>
